<compile_context>
chip_gen: v6e
topology: v6e:2x2x1
jax: 0.10.0
libtpu: 0.0.40
codegen_flags: <defaults>
</compile_context>

<pallas_src>
import functools

import jax
import jax.numpy as jnp
from jax.experimental import pallas as pl
from jax.experimental.pallas import tpu as pltpu


def _se_kernel(x_ref, w1t_ref, w2t_ref, o_ref, *, inv_len):
    # x_ref / o_ref: (Bt, C, Lp) block in the native input dtype.
    x = x_ref[...]                                                  # (Bt, C, Lp)

    # Squeeze: global average pool over L. Accumulate in f32 and divide by the
    # true (unpadded) length so zero-padding along L does not bias the mean.
    y = jnp.sum(x, axis=-1, dtype=jnp.float32) * inv_len            # (Bt, C)

    # Excitation: Linear -> ReLU -> Linear -> Sigmoid (no biases), all in f32.
    h = jnp.dot(y, w1t_ref[...].astype(jnp.float32),
                preferred_element_type=jnp.float32)                 # (Bt, H)
    h = jnp.maximum(h, 0.0)
    s = jnp.dot(h, w2t_ref[...].astype(jnp.float32),
                preferred_element_type=jnp.float32)                 # (Bt, C)
    s = jax.nn.sigmoid(s)

    # Scale: keep the mem-bound elementwise pass in the native dtype — one
    # multiply per element, no f32 copy of the whole block.
    gate = s.astype(x.dtype)[:, :, None]                            # (Bt, C, 1)
    o_ref[...] = (x * gate).astype(o_ref.dtype)


def _choose_bt(batch, per_batch_bytes, budget_bytes):
    """Largest divisor of `batch` whose block fits the VMEM budget and, when
    batch >= 2, leaves at least two grid steps (v7x has 2 TensorCores)."""
    max_bt = max(1, budget_bytes // max(1, per_batch_bytes))
    if batch >= 2:
        max_bt = min(max_bt, max(1, batch // 2))
    max_bt = max(1, min(max_bt, batch))
    for bt in range(max_bt, 0, -1):
        if batch % bt == 0:
            return bt
    return 1


def se_layer(x, w1t, w2t, *, block_budget_bytes=6 * 1024 * 1024):
    """x: (B, C, L); w1t: (C, H); w2t: (H, C) with H = C // reduction."""
    B, C, L = x.shape
    H = w1t.shape[1]

    # Lane-dense loads/stores: pad L up to a multiple of 128 (masked partial
    # stores are the biggest measured penalty for mem-bound kernels).
    Lp = ((L + 127) // 128) * 128
    x_p = x if Lp == L else jnp.pad(x, ((0, 0), (0, 0), (0, Lp - L)))

    itemsize = jnp.dtype(x.dtype).itemsize
    per_batch_bytes = C * Lp * itemsize
    bt = _choose_bt(B, per_batch_bytes, block_budget_bytes)
    grid = (B // bt,)
    # NOTE: for L so large that even a (1, C, Lp) block exceeds the VMEM budget
    # this would need a two-phase structure (reduce over L-tiles into (B, C)
    # means, then a second tiled pass applying the gate). Not needed at these
    # shapes.

    out_p = pl.pallas_call(
        functools.partial(_se_kernel, inv_len=1.0 / float(L)),
        out_shape=jax.ShapeDtypeStruct((B, C, Lp), x.dtype),
        grid_spec=pltpu.PrefetchScalarGridSpec(
            num_scalar_prefetch=0,
            grid=grid,
            in_specs=[
                pl.BlockSpec((bt, C, Lp), lambda b: (b, 0, 0)),
                # Weights: constant block index across the grid, so the
                # pipeline does not re-fetch them each step; they are tiny
                # (C*H elements) next to the x block.
                pl.BlockSpec((C, H), lambda b: (0, 0)),
                pl.BlockSpec((H, C), lambda b: (0, 0)),
            ],
            out_specs=pl.BlockSpec((bt, C, Lp), lambda b: (b, 0, 0)),
        ),
        compiler_params=pltpu.CompilerParams(
            dimension_semantics=("parallel",),
            vmem_limit_bytes=48 * 1024 * 1024,
        ),
    )(x_p, w1t, w2t)

    return out_p if Lp == L else out_p[:, :, :L]


def reference_se_layer(x, w1t, w2t):
    y = jnp.mean(x.astype(jnp.float32), axis=-1)                    # (B, C)
    h = jnp.maximum(y @ w1t.astype(jnp.float32), 0.0)               # (B, H)
    s = jax.nn.sigmoid(h @ w2t.astype(jnp.float32))                 # (B, C)
    return (x * s[:, :, None].astype(x.dtype)).astype(x.dtype)


if __name__ == "__main__":
    # Small shapes consistent with the module: channels divisible by reduction=16.
    B, C, L = 2, 32, 128
    reduction = 16
    H = C // reduction

    key = jax.random.PRNGKey(0)
    kx, k1, k2 = jax.random.split(key, 3)

    x = jax.random.normal(kx, (B, C, L), dtype=jnp.float32)
    # Linear weight shapes: (H, C) and (C, H); stored pre-transposed for the kernel.
    w1 = jax.random.normal(k1, (H, C), dtype=jnp.float32) * (1.0 / jnp.sqrt(C))
    w2 = jax.random.normal(k2, (C, H), dtype=jnp.float32) * (1.0 / jnp.sqrt(H))
    w1t = w1.T  # (C, H)
    w2t = w2.T  # (H, C)

    out = jax.block_until_ready(se_layer(x, w1t, w2t))

    ref = reference_se_layer(x, w1t, w2t)
    assert out.shape == (B, C, L)
    assert jnp.allclose(out, ref, atol=1e-5, rtol=1e-5)

    print("KERNEL_OK")
</pallas_src>

<mosaic_0001>
module attributes {stable_mosaic.version = 11 : i64} {
  func.func @_se_kernel(%arg0: i32, %arg1: memref<1x32x128xf32, #tpu.memory_space<vmem>>, %arg2: memref<32x2xf32, #tpu.memory_space<vmem>>, %arg3: memref<2x32xf32, #tpu.memory_space<vmem>>, %arg4: memref<1x32x128xf32, #tpu.memory_space<vmem>>) attributes {dimension_semantics = [#tpu.dimension_semantics<parallel>], iteration_bounds = array<i64: 2>, scalar_prefetch = 0 : i64, scratch_operands = 0 : i64, tpu.core_type = #tpu.core_type<tc>, window_params = [{transform_indices = @transform_0, window_bounds = array<i64: 1, 32, 128>}, {pipeline_mode = #tpu.pipeline_mode<synchronous>, transform_indices = @transform_1, window_bounds = array<i64: 32, 2>}, {pipeline_mode = #tpu.pipeline_mode<synchronous>, transform_indices = @transform_2, window_bounds = array<i64: 2, 32>}, {transform_indices = @transform_3, window_bounds = array<i64: 1, 32, 128>}]} {
    %c0 = arith.constant 0 : index
    %c0_0 = arith.constant 0 : index
    %c0_1 = arith.constant 0 : index
    %0 = vector.load %arg1[%c0, %c0_0, %c0_1] : memref<1x32x128xf32, #tpu.memory_space<vmem>>, vector<1x32x128xf32>
    %cst = arith.constant dense<0.000000e+00> : vector<1x32xf32>
    %1 = vector.multi_reduction <add>, %0, %cst [2] : vector<1x32x128xf32> to vector<1x32xf32>
    %cst_2 = arith.constant 7.812500e-03 : f32
    %2 = vector.broadcast %cst_2 : f32 to vector<1x32xf32>
    %3 = arith.mulf %1, %2 : vector<1x32xf32>
    %c0_3 = arith.constant 0 : index
    %c0_4 = arith.constant 0 : index
    %4 = vector.load %arg2[%c0_3, %c0_4] : memref<32x2xf32, #tpu.memory_space<vmem>>, vector<32x2xf32>
    %cst_5 = arith.constant dense<0.000000e+00> : vector<1x2xf32>
    %5 = tpu.matmul %3, %4, %cst_5 {dimension_numbers = #tpu.dot_dimension_numbers<[1], [0], [0], [1], [0, 0, 1, 1], [], []>} : vector<1x32xf32>, vector<32x2xf32>, vector<1x2xf32> -> vector<1x2xf32>
    %cst_6 = arith.constant 0.000000e+00 : f32
    %6 = vector.broadcast %cst_6 : f32 to vector<1x2xf32>
    %7 = arith.maximumf %5, %6 : vector<1x2xf32>
    %c0_7 = arith.constant 0 : index
    %c0_8 = arith.constant 0 : index
    %8 = vector.load %arg3[%c0_7, %c0_8] : memref<2x32xf32, #tpu.memory_space<vmem>>, vector<2x32xf32>
    %cst_9 = arith.constant dense<0.000000e+00> : vector<1x32xf32>
    %9 = tpu.matmul %7, %8, %cst_9 {dimension_numbers = #tpu.dot_dimension_numbers<[1], [0], [0], [1], [0, 0, 1, 1], [], []>} : vector<1x2xf32>, vector<2x32xf32>, vector<1x32xf32> -> vector<1x32xf32>
    %10 = arith.negf %9 : vector<1x32xf32>
    %11 = math.exp %10 : vector<1x32xf32>
    %cst_10 = arith.constant 1.000000e+00 : f32
    %12 = vector.broadcast %cst_10 : f32 to vector<1x32xf32>
    %13 = arith.addf %12, %11 : vector<1x32xf32>
    %14 = arith.divf %12, %13 : vector<1x32xf32>
    %15 = vector.shape_cast %14 : vector<1x32xf32> to vector<1x32x1xf32>
    %16 = vector.broadcast %15 : vector<1x32x1xf32> to vector<1x32x128xf32>
    %17 = arith.mulf %0, %16 : vector<1x32x128xf32>
    %c0_11 = arith.constant 0 : index
    %c0_12 = arith.constant 0 : index
    %c0_13 = arith.constant 0 : index
    %18 = vector.load %arg4[%c0_11, %c0_12, %c0_13] : memref<1x32x128xf32, #tpu.memory_space<vmem>>, vector<1x32x128xf32>
    tpu.vector_store %arg4[%c0_11, %c0_12, %c0_13], %17 {strides = array<i32>} : memref<1x32x128xf32, #tpu.memory_space<vmem>>, vector<1x32x128xf32>,
    return
  }
  func.func @transform_0(%arg0: i32) -> (i32, i32, i32) {
    %c0_i32 = arith.constant 0 : i32
    %c0_i32_0 = arith.constant 0 : i32
    %c0_i32_1 = arith.constant 0 : i32
    return %arg0, %c0_i32, %c0_i32_0 : i32, i32, i32
  }
  func.func @transform_1(%arg0: i32) -> (i32, i32) {
    %c0_i32 = arith.constant 0 : i32
    %c0_i32_0 = arith.constant 0 : i32
    %c0_i32_1 = arith.constant 0 : i32
    return %c0_i32, %c0_i32_0 : i32, i32
  }
  func.func @transform_2(%arg0: i32) -> (i32, i32) {
    %c0_i32 = arith.constant 0 : i32
    %c0_i32_0 = arith.constant 0 : i32
    %c0_i32_1 = arith.constant 0 : i32
    return %c0_i32, %c0_i32_0 : i32, i32
  }
  func.func @transform_3(%arg0: i32) -> (i32, i32, i32) {
    %c0_i32 = arith.constant 0 : i32
    %c0_i32_0 = arith.constant 0 : i32
    %c0_i32_1 = arith.constant 0 : i32
    return %arg0, %c0_i32, %c0_i32_0 : i32, i32, i32
  }
}

</mosaic_0001>

<bundles_post_ra>
// kernel: tpu_custom_call.1
= control target key start
LH: loop header
LB: loop body
LE: loop exit
PB: predicated region body
PF: predicated region fallthrough
CT: control target
= control target key end

     0   :  { %8 = vsyncpa [#allocation3], 0  ;;  %s923_s0 = inlined_call_operand.hbm [shape: f32[2,32,128], index: 0, kind: input, shape index: {}]   ;;  %s924_s1 = inlined_call_operand.vmem [shape: f32[32,2], index: 1, kind: input, shape index: {}]   ;;  %s925_s2 = inlined_call_operand.vmem [shape: f32[2,32], index: 2, kind: input, shape index: {}]   ;;  %s926_s3 = inlined_call_operand.hbm [shape: f32[2,32,128], index: 3, kind: output, shape index: {}]  }
   0x1   :  { %10 = vsyncpa [#allocation3 + $0x1], 0 }
   0x2   :  { %11 = vsyncpa [#allocation4], 0 }
   0x3   :  { %13 = vsyncpa [#allocation4 + $0x1], 0  ;;  %s734_s12 = smov 0   ;;  %s736_s13 = smov 0  }
   0x4   :  { %s738_s14 = smov 0   ;;  %s740_s15 = smov 0  }
   0x5 LB: > { %s755_s16 = sadd.s32 4294967295, %s704_s15   ;;  %s513_s17 = sadd.s32 4294967294, %s704_s15   ;;  %s704_s15 = sphi %s740_s15, %s941_s15   ;;  %s700_s14 = sphi %s738_s14, %s940_s14   ;;  %s696_s13 = sphi %s736_s13, %s939_s13   ;;  %s692_s12 = sphi %s734_s12, %s938_s12  }
   0x6   : > { %s759_s18 = sadd.s32 1, %s704_s15   ;;  %s26_s19 = sadd.s32 1, %s700_s14 }
   0x7   : > { %s23_s20 = ssub.s32 %s704_s15, %s759_s18  ;;  %p33_p0 = scmp.ne.s32.totalorder %s700_s14, %s696_s13 }
   0x8   : > { %p24_p1 = scmp.eq.s32.totalorder %s23_s20, 0  ;;  %p34_p2 = scmp.eq.s32.totalorder %s704_s15, 0 }
   0x9   : > { %p39_p3 = scmp.ne.s32.totalorder %s696_s13, %s692_s12  ;;  %p40_p4 = scmp.eq.s32.totalorder %s755_s16, 0 }
   0xa   : > { %s771_s21 = scalar_select %p24_p1, %s700_s14, %s26_s19  }
   0xb   : > { %p773_p5 = por %p34_p2, %p33_p0  ;;  %p777_p6 = por %p40_p4, %p39_p3 }
   0xc   : > { %p105_p7 = scmp.eq.s32.totalorder %s755_s16, 1  ;;  %p111_p8 = scmp.eq.s32.totalorder %s513_s17, 1 }
   0xd   : > { %s930_s23 = scalar_select %p777_p6, 1, 0 }
   0xe   : > { %p568_p10 = scmp.lt.s32.totalorder %s704_s15, 2  ;;  %p784_p11 = por %p105_p7, %p33_p0 }
   0xf   : > { %p788_p12 = por %p111_p8, %p39_p3  ;;  %s137_s26 = sand.u32 1, %s700_s14  }
  0x10   : > { %s931_s24 = scalar_select %p784_p11, 1, 0 }
  0x11   : > { %s932_s25 = scalar_select %p788_p12, 1, 0 }
  0x12   : > { %s531_s27 = sshll.u32 %s704_s15, 9  ;;  %s516_s28 = sshll.u32 %s137_s26, 5 }
  0x13   : > { %s797_s4 = scalar_lea.hbm %s923_s0, %s531_s27  ;;  %s141_s5 = scalar_lea.vmem [#allocation2], %s516_s28 }
  0x14   : > { %s148_s6 = sshll.u32 %s141_s5, 4  ;;  %p801_p13 = pnand %p568_p10, %p773_p5  ;;  %s805_s6 = int_to_ptr.vmem [resolvable:$true] %s148_s6 }
  0x15   : > { %s807_s8 = scalar_lea.sflag [#allocation3], %s137_s26  ;;  %s612_s9 = scalar_lea.hbm %s797_s4, 512 }
  0x16   : > { %p613_p0 = scmp.ne.s32.totalorder %s797_s4, %s612_s9  ;;  %p614_p1 = pneg %p801_p13 }
  0x17   : > { %s617_s17 = scalar_lea.hbm %s923_s0, 1024  ;;  %p618_p4 = scmp.lt.s32.totalorder %s797_s4, %s923_s0 }
  0x18   : > { %p615_p2 = pnand %p614_p1, %p613_p0  ;;  %p619_p5 = scmp.lt.s32.totalorder %s617_s17, %s612_s9 }
  0x1a   : > { %p616_p3 = pneg %p615_p2  ;;  %p620_p7 = por %p619_p5, %p618_p4 }
  0x1c   : > { %p621_p8 = pnand %p620_p7, %p616_p3 }
  0x1e   : > { %624 = shalt.err (!%p621_p8)
}
  0x1f   : > { %s625_s22 = scalar_lea.vmem %s805_s6, 512  ;;  %s706_s26 = smov [#allocation2]  }
  0x20   : > { %p626_p10 = scmp.ne.s32.totalorder %s805_s6, %s625_s22  ;;  %s630_s27 = sshll.u32 %s706_s26, 4  ;;  %s631_s27 = int_to_ptr.vmem [resolvable:$false] %s630_s27 }
  0x21   : > { %s632_s28 = scalar_lea.vmem %s631_s27, 1024  ;;  %p633_p2 = scmp.lt.s32.totalorder %s805_s6, %s631_s27 }
  0x22   : > { %p628_p9 = pnand %p626_p10, %p614_p1  ;;  %p634_p12 = scmp.lt.s32.totalorder %s632_s28, %s625_s22 }
  0x24   : > { %p629_p0 = pneg %p628_p9  ;;  %p635_p11 = por %p634_p12, %p633_p2 }
  0x26   : > { %p636_p6 = pnand %p635_p11, %p629_p0 }
  0x28   : > { %639 = shalt.err (!%p636_p6)
}
  0x29   : > { %s707_s29 = smov 128   ;;  %s708_s30 = smov 8  }
  0x2a   : > { %563 = dma.hbm_to_vmem [thread:$0]  (!%p801_p13), %s797_s4, 512, %s805_s6, %s807_s8, %s707_s29, %s707_s29, %s708_s30  }
  0x2b   : > { %p519_p9 = scmp.ge.s32.totalorder %s704_s15, 1  ;;  %p156_p1 = scmp.lt.s32.totalorder %s704_s15, 3 }
  0x2d   : > { %p157_p3 = pnand %p519_p9, %p156_p1 }
  0x2e   : > { %s831_s5 = sand.u32 (!%p157_p3), 1, %s696_s13   ;;  %p934_p6 = scmp.ne.s32.totalorder (!%p157_p3), %s930_s23, 0 }
  0x2f   : > { %160 = sbr.rel (%p157_p3) target bundleno = 764 (0x2fc), region = 32  ;;  %s520_s9 = sshll.u32 (!%p157_p3), %s831_s5, 5 }
  0x30   : > { %s163_s10 = scalar_lea.sflag (!%p157_p3), [#allocation3], %s831_s5  ;;  %s166_s11 = scalar_lea.vmem (!%p157_p3), [#allocation2], %s520_s9 }
  0x34   : > { %683 = dma.done.wait (%p934_p6), %s163_s10, 512  }
  0x35   : > { %685 = vsyncadd (%p934_p6), %s163_s10, 4294966784  ;;  %v841_v0 = vld [vmem:[%s166_s11] sm:$0xff]  ;;  %v843_v1 = vld [vmem:[%s166_s11 + $0x10] sm:$0xff]  ;;  %v709_v4 = vmov 0.0   ;;  %vm710_vm0 = vmmov 0   ;;  %v213_v9 = vlaneseq  ;;  %vm224_vm1 = vcmask 130112  }
  0x36   : > { %193 = vadd.xlane.f32.xlu0 %v841_v0  ;;  %197 = vadd.xlane.f32.xlu1 %v843_v1  ;;  %v847_v2 = vld [vmem:[%s166_s11 + $0x8] sm:$0xff]  ;;  %v849_v3 = vld [vmem:[%s166_s11 + $0x18] sm:$0xff]  ;;  %v207_v6 = vld [vmem:[%s924_s1 + $0x10] sm:$0xff]  ;;  %vm231_vm2 = vcmask 195712   ;;  %vm238_vm3 = vcmask 261312   ;;  %vm240_vm4 = vcmask 261120  }
  0x37   : > { %540 = vmatprep.subr.mxu0 %v709_v4  ;;  %v208_v5 = vld [vmem:[%s924_s1 + $0x18] sm:$0xff]  ;;  %551 = vmatprep.subr.mxu1 %v709_v4  ;;  %v206_v7 = vld [vmem:[%s924_s1 + $0x8] sm:$0xff]  ;;  %v205_v8 = vld [vmem:[%s924_s1] sm:$0xff]  ;;  %v214_v10 = vand.u32 127, %v213_v9  ;;  %v216_v11 = vshrl.u32 %v213_v9, 7  ;;  %vm319_vm5 = vcmask 1041408  }
  0x38   : > { %541 = vmatpush3.msra.mxu0 %v208_v5  ;;  %548 = vmatprep.mubr.msk.f32.mxu0 %vm710_vm0, %v709_v4  ;;  %v314_v34 = vld [vmem:[%s925_s2] sm:$0x3]  ;;  %vm315_vm6 = vcmask 15360   ;;  %s188_s27 = scalar_lea.vmem [#allocation5], %s520_s9  ;;  %s532_s29 = sshll.u32 %s755_s16, 9 }
  0x39   : > { %542 = vmatprep.subr.mxu0 %v709_v4  ;;  %553 = vmatprep.mubr.msk.f32.mxu1 %vm710_vm0, %v709_v4  ;;  %v219_v12 = vadd.s32 4294967288, %v214_v10  ;;  %v233_v13 = vadd.s32 4294967272, %v214_v10  ;;  %v226_v15 = vadd.s32 4294967280, %v214_v10  ;;  %v217_v17 = vsub.s32 %v214_v10, %v216_v11  ;;  %s440_s28 = sshll.u32 %s188_s27, 4  ;;  %s879_s11 = scalar_lea.hbm %s926_s3, %s532_s29  ;;  %s874_s28 = int_to_ptr.vmem [resolvable:$true] %s440_s28 }
  0x3a   : > { %195 = vadd.xlane.f32.xlu0 %v847_v2  ;;  %199 = vadd.xlane.f32.xlu1 %v849_v3  ;;  %v401_v43 = vsub.s32 0, %v216_v11  ;;  %s427_s9 = scalar_lea.sflag [#allocation4], %s831_s5  ;;  %s640_s23 = scalar_lea.vmem %s874_s28, 512 }
  0x3b   : > { %543 = vmatpush3.msra.mxu0 %v207_v6  ;;  %v222_v19 = vsub.s32 %v219_v12, %v216_v11  ;;  %v236_v20 = vsub.s32 %v233_v13, %v216_v11  ;;  %v229_v21 = vsub.s32 %v226_v15, %v216_v11  ;;  %552 = vmatpush3.msk.msra.mxu1 %vm319_vm5, %v314_v34  ;;  %p641_p11 = scmp.ne.s32.totalorder %s874_s28, %s640_s23  ;;  %p935_p12 = scmp.ne.s32.totalorder %s931_s24, 0 }
  0x3c   : > { %544 = vmatprep.subr.mxu0 %v709_v4  ;;  %s711_s16 = smov [#allocation5]  }
  0x3d   : > { %545 = vmatpush3.msra.mxu0 %v206_v7  ;;  %p642_p13 = pnand %p641_p11, %p935_p12  ;;  %s644_s4 = sshll.u32 %s711_s16, 4  ;;  %s645_s4 = int_to_ptr.vmem [resolvable:$false] %s644_s4 }
  0x3e   : > { %546 = vmatprep.subr.mxu0 %v709_v4  ;;  %s646_s6 = scalar_lea.vmem %s645_s4, 1024  ;;  %p647_p5 = scmp.lt.s32.totalorder %s874_s28, %s645_s4 }
  0x3f   : > { %547 = vmatpush3.msra.mxu0 %v205_v8  ;;  %p643_p4 = pneg %p642_p13  ;;  %p648_p7 = scmp.lt.s32.totalorder %s646_s6, %s640_s23 }
  0x41   : > { %p649_p8 = por %p648_p7, %p647_p5 }
  0x43   : > { %p650_p10 = pnand %p649_p8, %p643_p4 }
  0xbf   : > { %v194_v14 = vpop.xlane.xlu0 %193  ;;  %v198_v16 = vpop.xlane.xlu1 %197 }
  0xc0   : > { %v201_v18 = vmul.f32 0.0078125, %v194_v14  ;;  %v203_v22 = vmul.f32 0.0078125, %v198_v16 }
  0xc2   : > { %v218_v27 = vrot.slane %v201_v18, %v217_v17  ;;  %v230_v30 = vrot.slane %v203_v22, %v229_v21 }
  0xc3   : > { %v196_v23 = vpop.xlane.xlu0 %195  ;;  %v200_v24 = vpop.xlane.xlu1 %199 }
  0xc4   : > { %v202_v25 = vmul.f32 0.0078125, %v196_v23  ;;  %v204_v26 = vmul.f32 0.0078125, %v200_v24 }
  0xc6   : > { %v223_v28 = vrot.slane %v202_v25, %v222_v19  ;;  %v237_v29 = vrot.slane %v204_v26, %v236_v20 }
  0xc8   : > { %v225_v31 = vsel %vm224_vm1, %v223_v28, %v218_v27 }
  0xc9   : > { %v232_v32 = vsel %vm231_vm2, %v230_v30, %v225_v31 }
  0xca   : > { %v239_v33 = vsel %vm238_vm3, %v237_v29, %v232_v32 }
  0xcb   : > { %549 = vmatmul.mubr.msk.f32.vlgmr.msra.gmra.mxu0 %vm240_vm4, %v239_v33 }
 0x18b   : > { %v309_v35 = vpop.f32.mrf.mxu0 }
 0x18c   : > { %v313_v36 = vmax.f32 %v309_v35, 0.0 }
 0x18d   : > { %v550_v37 = vpop.f32.mrf.mxu0 }
 0x18e   : > { %554 = vmatmul.mubr.msk.f32.vlgmr.msra.gmra.mxu1 %vm315_vm6, %v313_v36 }
 0x24e   : > { %v389_v38 = vpop.f32.mrf.mxu1 }
 0x24f   : > { %v525_v39 = vmul.f32 -1.442695, %v389_v38 }
 0x250   : > { %v555_v40 = vpop.f32.mrf.mxu1 }
 0x251   : > { %608 = vpow2.f32 %v525_v39 }
 0x25e   : > { %v609_v41 = vpop.eup %608 }
 0x25f   : > { %v396_v42 = vadd.f32 1.0, %v609_v41 }
 0x261   : > { %610 = vrcp.f32 %v396_v42 }
 0x26e   : > { %v611_v44 = vpop.eup %610 }
 0x26f   : > { %v402_v45 = vrot.slane %v611_v44, %v401_v43 }
 0x271   : > { %408 = vbcast.lane.b32.xlu1 %v402_v45, 264  ;;  %404 = vbcast.lane.b32.xlu0 %v402_v45, 256 }
 0x275   : > { %412 = vbcast.lane.b32.xlu1 %v402_v45, 272 }
 0x279   : > { %416 = vbcast.lane.b32.xlu1 %v402_v45, 280 }
 0x2e3   : > { %v409_v46 = vpop.permute.xlu1 %408  ;;  %v405_v47 = vpop.permute.xlu0 %404 }
 0x2e4   : > { %v419_v48 = vmul.f32 %v409_v46, %v847_v2  ;;  %v418_v49 = vmul.f32 %v405_v47, %v841_v0 }
 0x2e6   : > { %423 = vst [vmem:[%s188_s27 + $0x8] sm:$0xff] %v419_v48  ;;  %422 = vst [vmem:[%s188_s27] sm:$0xff] %v418_v49 }
 0x2e7   : > { %v413_v50 = vpop.permute.xlu1 %412 }
 0x2e8   : > { %v420_v51 = vmul.f32 %v413_v50, %v843_v1 }
 0x2ea   : > { %424 = vst [vmem:[%s188_s27 + $0x10] sm:$0xff] %v420_v51 }
 0x2eb   : > { %v417_v52 = vpop.permute.xlu1 %416 }
 0x2ec   : > { %v421_v53 = vmul.f32 %v417_v52, %v849_v3 }
 0x2ee   : > { %425 = vst [vmem:[%s188_s27 + $0x18] sm:$0xff] %v421_v53 }
 0x2ef   : > { %653 = shalt.err (!%p650_p10)
}
 0x2f0   : > { %s654_s7 = scalar_lea.hbm %s879_s11, 512  ;;  %s658_s19 = scalar_lea.hbm %s926_s3, 1024 }
 0x2f1   : > { %p655_p0 = scmp.ne.s32.totalorder %s879_s11, %s654_s7  ;;  %p659_p1 = scmp.lt.s32.totalorder %s879_s11, %s926_s3 }
 0x2f2   : > { %p660_p3 = scmp.lt.s32.totalorder %s658_s19, %s654_s7 }
 0x2f3   : > { %p656_p2 = pnand %p655_p0, %p935_p12 }
 0x2f4   : > { %p661_p6 = por %p660_p3, %p659_p1 }
 0x2f5   : > { %p657_p9 = pneg %p656_p2 }
 0x2f7   : > { %p662_p11 = pnand %p661_p6, %p657_p9 }
 0x2f9   : > { %665 = shalt.err (!%p662_p11)
}
 0x2fa   : > { %s712_s26 = smov 128   ;;  %s713_s27 = smov 8  }
 0x2fb   : > { %558 = dma.vmem_to_hbm [thread:$0]  (%p935_p12), %s874_s28, 512, %s879_s11, %s427_s9, %s712_s26, %s712_s26, %s713_s27  }
 0x2fc PF: > { %s455_s29 = sand.u32 1, %s692_s12   ;;  %p936_p13 = scmp.ne.s32.totalorder %s932_s25, 0 }
 0x2fd   : > { %p937_p4 = scmp.ge.s32.totalorder %s704_s15, 2  ;;  %s456_s30 = scalar_lea.sflag [#allocation4], %s455_s29 }
 0x2ff   : > { %p565_p5 = pnand %p937_p4, %p936_p13 }
 0x301   : > { %p566_p7 = pneg %p565_p5 }
 0x303   : > { %687 = dma.done.wait (%p566_p7), %s456_s30, 512  }
 0x304   : > { %689 = vsyncadd (%p566_p7), %s456_s30, 4294966784  ;;  %p16_p8 = scmp.ge.s32.totalorder %s759_s18, 4   ;;  %s938_s12 = smov %s696_s13 }
 0x305   : > { %s939_s13 = smov %s700_s14  ;;  %s940_s14 = smov %s771_s21 }
 0x306   : > { %s941_s15 = smov %s759_s18  ;;  %18 = sbr.rel (!%p16_p8) target bundleno = 5 (0x5), region = 77 }
 0x30b   :  { %461 = vsyncpa [#allocation3], 1 }
 0x30c   :  { %463 = vsyncpa [#allocation3 + $0x1], 1 }
 0x30d   :  { %464 = vsyncpa [#allocation4], 1 }
 0x30e   :  { %466 = vsyncpa [#allocation4 + $0x1], 1 }

</bundles_post_ra>
